<compile_context>
chip_gen: v7x
topology: tpu7x:2x2x1
jax: 0.10.0
libtpu: 0.0.40
codegen_flags: <defaults>
</compile_context>

<pallas_src>
import functools

import jax
import jax.numpy as jnp
from jax import lax
from jax.experimental import pallas as pl
from jax.experimental.pallas import tpu as pltpu


def _joints_mse_kernel(pred_ref, gt_ref, w_ref, out_ref, acc_ref, *,
                       rows, tm, group, blocks_per_core, scale):
    c = pl.program_id(0)   # core-split axis (v7x only has >1)
    i = pl.program_id(1)   # row-block axis within this core ("arbitrary")

    @pl.when(i == 0)
    def _():
        acc_ref[...] = jnp.zeros_like(acc_ref)

    # Logical first row of this tile (unclamped). Rows >= `rows` are masked to
    # zero in the tail path, which also neutralizes duplicated tiles produced
    # by the clamped index_map on odd block counts.
    row0 = (c * blocks_per_core + i) * tm
    folds = group // 8
    n_groups = tm // group

    def accum(g, masked):
        off = pl.multiple_of(g * group, group)
        p = pred_ref[pl.ds(off, group), :].astype(jnp.float32)
        t = gt_ref[pl.ds(off, group), :].astype(jnp.float32)
        w = w_ref[pl.ds(off, group), :].astype(jnp.float32)
        d = p - t
        v = w * (d * d)                                       # (group, HW)
        if masked:
            sub = lax.broadcasted_iota(jnp.int32, (group, 1), 0)
            valid = (row0 + off + sub) < rows
            # select (not multiply) so garbage/NaN in padded rows is dropped
            v = jnp.where(valid, v, jnp.float32(0.0))
        # Fold `group` rows into the 8-sublane accumulator with pure VPU adds,
        # touching acc_ref only once per group.
        r = v[0:8, :]
        for f in range(1, folds):
            r = r + v[8 * f:8 * (f + 1), :]
        acc_ref[...] += r

    def fast_body(g, carry):
        accum(g, masked=False)
        return carry

    def tail_body(g, carry):
        accum(g, masked=True)
        return carry

    @pl.when(row0 + tm <= rows)            # full tile: unmasked steady state
    def _():
        lax.fori_loop(0, n_groups, fast_body, jnp.int32(0))

    @pl.when(row0 + tm > rows)             # ragged tail / clamped duplicate
    def _():
        lax.fori_loop(0, n_groups, tail_body, jnp.int32(0))

    @pl.when(i == pl.num_programs(1) - 1)
    def _():
        total = jnp.sum(acc_ref[...]) * jnp.float32(scale)
        out_ref[...] = jnp.broadcast_to(total, out_ref.shape)


def joints_mse_loss(output, target, target_weight, use_target_weight=True):
    """Pallas implementation of JointsMSELoss.forward. Returns a scalar (f32)."""
    B, J, H, W = output.shape
    HW = H * W
    rows = B * J

    # Pure metadata reshapes -- keep original dtype, cast happens in-kernel.
    pred = output.reshape(rows, HW)
    gt = target.reshape(rows, HW)
    if use_target_weight:
        w = target_weight.reshape(rows, 1)
    else:
        w = jnp.ones((rows, 1), jnp.float32)

    itemsize = jnp.dtype(output.dtype).itemsize
    rows_ceil8 = ((rows + 7) // 8) * 8

    # ---- device-aware core split and VMEM budget ----------------------------
    try:
        kind = jax.devices()[0].device_kind.lower()
    except Exception:  # pragma: no cover - defensive
        kind = ""
    is_v7x = "v7" in kind
    num_cores = 2 if is_v7x else 1
    if is_v7x:
        tile_budget = 20 * 1024 * 1024      # double-buffered footprint target
        vmem_limit = 48 * 1024 * 1024       # 64 MiB physical VMEM on v7x
    else:
        tile_budget = 28 * 1024 * 1024
        vmem_limit = 64 * 1024 * 1024       # 128 MiB physical VMEM on v5e/v6e

    # Double-buffered per-row bytes: pred + gt tiles plus the lane-padded
    # (tm, 1) weight block (pads to 128 lanes in VMEM).
    per_row = 4 * HW * itemsize + 2 * 128 * 4
    budget = tile_budget - 8 * HW * 4 - 64 * 1024   # acc scratch + slack
    tm = max(8, budget // per_row)
    if tm >= 32:
        tm = (tm // 32) * 32
    else:
        tm = (tm // 8) * 8
    tm = max(8, min(tm, rows_ceil8))
    if tm % 32 == 0:
        group = 32
    elif tm % 16 == 0:
        group = 16
    else:
        group = 8

    n_blocks = int(pl.cdiv(rows, tm))
    blocks_per_core = int(pl.cdiv(n_blocks, num_cores))

    def data_map(c, i):
        b = c * blocks_per_core + i
        # Clamp fully-out-of-range tiles (only possible for the 2-core split
        # with an odd block count) onto the last real tile; their rows are
        # masked to zero inside the kernel.
        return (jnp.minimum(b, n_blocks - 1), 0)

    scale = 0.5 / float(J * B * HW)
    kernel = functools.partial(
        _joints_mse_kernel,
        rows=rows, tm=tm, group=group,
        blocks_per_core=blocks_per_core, scale=scale)

    if num_cores > 1:
        core_sem = getattr(pltpu, "CORE_PARALLEL", "parallel")
        arb_sem = getattr(pltpu, "ARBITRARY", "arbitrary")
        dims = (core_sem, arb_sem)
    else:
        dims = ("arbitrary", "arbitrary")

    out = pl.pallas_call(
        kernel,
        out_shape=jax.ShapeDtypeStruct((num_cores, 8, 128), jnp.float32),
        grid_spec=pltpu.PrefetchScalarGridSpec(
            num_scalar_prefetch=0,
            grid=(num_cores, blocks_per_core),
            in_specs=[
                pl.BlockSpec((tm, HW), data_map),
                pl.BlockSpec((tm, HW), data_map),
                pl.BlockSpec((tm, 1), data_map),
            ],
            out_specs=pl.BlockSpec((1, 8, 128), lambda c, i: (c, 0, 0)),
            scratch_shapes=[pltpu.VMEM((8, HW), jnp.float32)],
        ),
        compiler_params=pltpu.CompilerParams(
            dimension_semantics=dims,
            vmem_limit_bytes=vmem_limit,
        ),
    )(pred, gt, w)
    # Each core's partial is broadcast over its (8,128) output block; take one
    # element per core and sum the partials.
    return out[:, 0, 0].sum()


def _reference_loss(output, target, target_weight, use_target_weight=True):
    B, J = output.shape[0], output.shape[1]
    pred = output.reshape(B, J, -1).astype(jnp.float32)
    gt = target.reshape(B, J, -1).astype(jnp.float32)
    loss = 0.0
    for idx in range(J):
        hp = pred[:, idx, :]
        hg = gt[:, idx, :]
        if use_target_weight:
            wj = target_weight[:, idx].astype(jnp.float32)  # (B, 1)
            loss = loss + 0.5 * jnp.mean(wj * (hp - hg) ** 2)
        else:
            loss = loss + 0.5 * jnp.mean((hp - hg) ** 2)
    return loss / J


if __name__ == "__main__":
    key = jax.random.PRNGKey(0)
    k1, k2, k3, k4 = jax.random.split(key, 4)

    # Case 1: small aligned shapes (B, J, H, W) = (2, 4, 16, 16).
    B, J, H, W = 2, 4, 16, 16
    output = jax.random.normal(k1, (B, J, H, W), dtype=jnp.float32)
    target = jax.random.normal(k2, (B, J, H, W), dtype=jnp.float32)
    target_weight = (
        jax.random.uniform(k3, (B, J, 1), dtype=jnp.float32) > 0.3
    ).astype(jnp.float32)

    loss = jax.block_until_ready(
        joints_mse_loss(output, target, target_weight, use_target_weight=True))
    ref = _reference_loss(output, target, target_weight, use_target_weight=True)
    assert jnp.allclose(loss, ref, rtol=1e-5, atol=1e-6), (loss, ref)

    # Case 2: ragged row count (B*J = 15, not a multiple of 8) exercises the
    # in-kernel tail-masking path and a non-multiple-of-128 HW.
    k5, k6, k7 = jax.random.split(k4, 3)
    B2, J2, H2, W2 = 3, 5, 12, 12
    output2 = jax.random.normal(k5, (B2, J2, H2, W2), dtype=jnp.float32)
    target2 = jax.random.normal(k6, (B2, J2, H2, W2), dtype=jnp.float32)
    tw2 = (jax.random.uniform(k7, (B2, J2, 1), dtype=jnp.float32) > 0.3
           ).astype(jnp.float32)

    loss2 = jax.block_until_ready(
        joints_mse_loss(output2, target2, tw2, use_target_weight=True))
    ref2 = _reference_loss(output2, target2, tw2, use_target_weight=True)
    assert jnp.allclose(loss2, ref2, rtol=1e-5, atol=1e-6), (loss2, ref2)

    print("KERNEL_OK")
</pallas_src>

<mosaic_0001>
module attributes {stable_mosaic.version = 11 : i64} {
  func.func @_joints_mse_kernel(%arg0: i32, %arg1: i32, %arg2: memref<8x256xf32, #tpu.memory_space<vmem>>, %arg3: memref<8x256xf32, #tpu.memory_space<vmem>>, %arg4: memref<8x1xf32, #tpu.memory_space<vmem>>, %arg5: memref<1x8x128xf32, #tpu.memory_space<vmem>>, %arg6: memref<8x256xf32, #tpu.memory_space<vmem>>) attributes {dimension_semantics = [#tpu.dimension_semantics<arbitrary>, #tpu.dimension_semantics<arbitrary>], iteration_bounds = array<i64: 1, 1>, scalar_prefetch = 0 : i64, scratch_operands = 1 : i64, tpu.core_type = #tpu.core_type<tc>, window_params = [{transform_indices = @transform_0, window_bounds = array<i64: 8, 256>}, {transform_indices = @transform_1, window_bounds = array<i64: 8, 256>}, {transform_indices = @transform_2, window_bounds = array<i64: 8, 1>}, {transform_indices = @transform_3, window_bounds = array<i64: 1, 8, 128>}]} {
    %c0_i32 = arith.constant 0 : i32
    %0 = arith.cmpi eq, %arg1, %c0_i32 : i32
    %1 = arith.extui %0 : i1 to i32
    %c0_i32_0 = arith.constant 0 : i32
    %2 = arith.cmpi ne, %1, %c0_i32_0 : i32
    scf.if %2 {
      %cst = arith.constant 0.000000e+00 : f32
      %17 = vector.broadcast %cst : f32 to vector<8x256xf32>
      %c0 = arith.constant 0 : index
      %c0_9 = arith.constant 0 : index
      %18 = vector.load %arg6[%c0, %c0_9] : memref<8x256xf32, #tpu.memory_space<vmem>>, vector<8x256xf32>
      tpu.vector_store %arg6[%c0, %c0_9], %17 {strides = array<i32>} : memref<8x256xf32, #tpu.memory_space<vmem>>, vector<8x256xf32>,
    } else {
    }
    %c1_i32 = arith.constant 1 : i32
    %3 = arith.muli %arg0, %c1_i32 : i32
    %4 = arith.addi %3, %arg1 : i32
    %c8_i32 = arith.constant 8 : i32
    %5 = arith.muli %4, %c8_i32 : i32
    %c8_i32_1 = arith.constant 8 : i32
    %6 = arith.addi %5, %c8_i32_1 : i32
    %c8_i32_2 = arith.constant 8 : i32
    %7 = arith.cmpi sle, %6, %c8_i32_2 : i32
    %8 = arith.extui %7 : i1 to i32
    %c0_i32_3 = arith.constant 0 : i32
    %9 = arith.cmpi ne, %8, %c0_i32_3 : i32
    scf.if %9 {
      %c0_i32_9 = arith.constant 0 : i32
      %c8_i32_10 = arith.constant 8 : i32
      %17 = arith.muli %c0_i32_9, %c8_i32_10 : i32
      %18 = tpu.assume_multiple %17, 8 : i32
      %19 = arith.index_cast %18 : i32 to index
      %c0 = arith.constant 0 : index
      %20 = vector.load %arg2[%19, %c0] : memref<8x256xf32, #tpu.memory_space<vmem>>, vector<8x256xf32>
      %21 = arith.index_cast %18 : i32 to index
      %c0_11 = arith.constant 0 : index
      %22 = vector.load %arg3[%21, %c0_11] : memref<8x256xf32, #tpu.memory_space<vmem>>, vector<8x256xf32>
      %23 = arith.index_cast %18 : i32 to index
      %c0_12 = arith.constant 0 : index
      %24 = vector.load %arg4[%23, %c0_12] : memref<8x1xf32, #tpu.memory_space<vmem>>, vector<8x1xf32>
      %25 = arith.subf %20, %22 : vector<8x256xf32>
      %26 = arith.mulf %25, %25 : vector<8x256xf32>
      %27 = vector.broadcast %24 : vector<8x1xf32> to vector<8x256xf32>
      %28 = arith.mulf %27, %26 : vector<8x256xf32>
      %c0_13 = arith.constant 0 : index
      %c0_14 = arith.constant 0 : index
      %29 = vector.load %arg6[%c0_13, %c0_14] : memref<8x256xf32, #tpu.memory_space<vmem>>, vector<8x256xf32>
      %30 = arith.addf %29, %28 : vector<8x256xf32>
      %c0_15 = arith.constant 0 : index
      %c0_16 = arith.constant 0 : index
      %31 = vector.load %arg6[%c0_15, %c0_16] : memref<8x256xf32, #tpu.memory_space<vmem>>, vector<8x256xf32>
      tpu.vector_store %arg6[%c0_15, %c0_16], %30 {strides = array<i32>} : memref<8x256xf32, #tpu.memory_space<vmem>>, vector<8x256xf32>,
      %c1_i32_17 = arith.constant 1 : i32
    } else {
    }
    %c8_i32_4 = arith.constant 8 : i32
    %10 = arith.addi %5, %c8_i32_4 : i32
    %c8_i32_5 = arith.constant 8 : i32
    %11 = arith.cmpi sgt, %10, %c8_i32_5 : i32
    %12 = arith.extui %11 : i1 to i32
    %c0_i32_6 = arith.constant 0 : i32
    %13 = arith.cmpi ne, %12, %c0_i32_6 : i32
    scf.if %13 {
      %c0_i32_9 = arith.constant 0 : i32
      %c8_i32_10 = arith.constant 8 : i32
      %17 = arith.muli %c0_i32_9, %c8_i32_10 : i32
      %18 = tpu.assume_multiple %17, 8 : i32
      %19 = arith.index_cast %18 : i32 to index
      %c0 = arith.constant 0 : index
      %20 = vector.load %arg2[%19, %c0] : memref<8x256xf32, #tpu.memory_space<vmem>>, vector<8x256xf32>
      %21 = arith.index_cast %18 : i32 to index
      %c0_11 = arith.constant 0 : index
      %22 = vector.load %arg3[%21, %c0_11] : memref<8x256xf32, #tpu.memory_space<vmem>>, vector<8x256xf32>
      %23 = arith.index_cast %18 : i32 to index
      %c0_12 = arith.constant 0 : index
      %24 = vector.load %arg4[%23, %c0_12] : memref<8x1xf32, #tpu.memory_space<vmem>>, vector<8x1xf32>
      %25 = arith.subf %20, %22 : vector<8x256xf32>
      %26 = arith.mulf %25, %25 : vector<8x256xf32>
      %27 = vector.broadcast %24 : vector<8x1xf32> to vector<8x256xf32>
      %28 = arith.mulf %27, %26 : vector<8x256xf32>
      %29 = tpu.iota {dimensions = array<i32: 0>} : vector<8x1xi32>
      %30 = arith.addi %5, %18 : i32
      %31 = vector.broadcast %30 : i32 to vector<8x1xi32>
      %32 = arith.addi %31, %29 : vector<8x1xi32>
      %c8_i32_13 = arith.constant 8 : i32
      %33 = vector.broadcast %c8_i32_13 : i32 to vector<8x1xi32>
      %34 = arith.cmpi slt, %32, %33 : vector<8x1xi32>
      %cst = arith.constant 0.000000e+00 : f32
      %35 = vector.shape_cast %34 : vector<8x1xi1> to vector<8x1xi1>
      %36 = vector.broadcast %35 : vector<8x1xi1> to vector<8x256xi1>
      %37 = vector.broadcast %cst : f32 to vector<8x256xf32>
      %38 = arith.select %36, %28, %37 : vector<8x256xi1>, vector<8x256xf32>
      %c0_14 = arith.constant 0 : index
      %c0_15 = arith.constant 0 : index
      %39 = vector.load %arg6[%c0_14, %c0_15] : memref<8x256xf32, #tpu.memory_space<vmem>>, vector<8x256xf32>
      %40 = arith.addf %39, %38 : vector<8x256xf32>
      %c0_16 = arith.constant 0 : index
      %c0_17 = arith.constant 0 : index
      %41 = vector.load %arg6[%c0_16, %c0_17] : memref<8x256xf32, #tpu.memory_space<vmem>>, vector<8x256xf32>
      tpu.vector_store %arg6[%c0_16, %c0_17], %40 {strides = array<i32>} : memref<8x256xf32, #tpu.memory_space<vmem>>, vector<8x256xf32>,
      %c1_i32_18 = arith.constant 1 : i32
    } else {
    }
    %c0_i32_7 = arith.constant 0 : i32
    %14 = arith.cmpi eq, %arg1, %c0_i32_7 : i32
    %15 = arith.extui %14 : i1 to i32
    %c0_i32_8 = arith.constant 0 : i32
    %16 = arith.cmpi ne, %15, %c0_i32_8 : i32
    scf.if %16 {
      %c0 = arith.constant 0 : index
      %c0_9 = arith.constant 0 : index
      %17 = vector.load %arg6[%c0, %c0_9] : memref<8x256xf32, #tpu.memory_space<vmem>>, vector<8x256xf32>
      %18 = vector.shape_cast %17 : vector<8x256xf32> to vector<1x8x256xf32>
      %cst = arith.constant dense<0.000000e+00> : vector<1xf32>
      %19 = vector.multi_reduction <add>, %18, %cst [1, 2] : vector<1x8x256xf32> to vector<1xf32>
      %20 = vector.shape_cast %19 : vector<1xf32> to vector<1x1x1xf32>
      %21 = vector.extract %20[0, 0, 0] : f32 from vector<1x1x1xf32>
      %cst_10 = arith.constant 2.44140625E-4 : f32
      %22 = arith.mulf %21, %cst_10 : f32
      %23 = vector.broadcast %22 : f32 to vector<1x8x128xf32>
      %c0_11 = arith.constant 0 : index
      %c0_12 = arith.constant 0 : index
      %c0_13 = arith.constant 0 : index
      %24 = vector.load %arg5[%c0_11, %c0_12, %c0_13] : memref<1x8x128xf32, #tpu.memory_space<vmem>>, vector<1x8x128xf32>
      tpu.vector_store %arg5[%c0_11, %c0_12, %c0_13], %23 {strides = array<i32>} : memref<1x8x128xf32, #tpu.memory_space<vmem>>, vector<1x8x128xf32>,
    } else {
    }
    return
  }
  func.func @transform_0(%arg0: i32, %arg1: i32) -> (i32, i32) {
    %c1_i32 = arith.constant 1 : i32
    %0 = arith.muli %arg0, %c1_i32 : i32
    %1 = arith.addi %0, %arg1 : i32
    %c0_i32 = arith.constant 0 : i32
    %2 = arith.minsi %1, %c0_i32 : i32
    %c0_i32_0 = arith.constant 0 : i32
    %c0_i32_1 = arith.constant 0 : i32
    return %2, %c0_i32_0 : i32, i32
  }
  func.func @transform_1(%arg0: i32, %arg1: i32) -> (i32, i32) {
    %c1_i32 = arith.constant 1 : i32
    %0 = arith.muli %arg0, %c1_i32 : i32
    %1 = arith.addi %0, %arg1 : i32
    %c0_i32 = arith.constant 0 : i32
    %2 = arith.minsi %1, %c0_i32 : i32
    %c0_i32_0 = arith.constant 0 : i32
    %c0_i32_1 = arith.constant 0 : i32
    return %2, %c0_i32_0 : i32, i32
  }
  func.func @transform_2(%arg0: i32, %arg1: i32) -> (i32, i32) {
    %c1_i32 = arith.constant 1 : i32
    %0 = arith.muli %arg0, %c1_i32 : i32
    %1 = arith.addi %0, %arg1 : i32
    %c0_i32 = arith.constant 0 : i32
    %2 = arith.minsi %1, %c0_i32 : i32
    %c0_i32_0 = arith.constant 0 : i32
    %c0_i32_1 = arith.constant 0 : i32
    return %2, %c0_i32_0 : i32, i32
  }
  func.func @transform_3(%arg0: i32, %arg1: i32) -> (i32, i32, i32) {
    %c0_i32 = arith.constant 0 : i32
    %c0_i32_0 = arith.constant 0 : i32
    %c0_i32_1 = arith.constant 0 : i32
    return %arg0, %c0_i32, %c0_i32_0 : i32, i32, i32
  }
}

</mosaic_0001>

<bundles_post_ra>
// kernel: tpu_custom_call.1
= control target key start
LH: loop header
LB: loop body
LE: loop exit
PB: predicated region body
PF: predicated region fallthrough
CT: control target
= control target key end

     0   :  { %8 = vsyncpa [#allocation4], 0  ;;  %s372_s0 = inlined_call_operand.hbm [shape: f32[8,256], index: 0, kind: input, shape index: {}]   ;;  %s373_s1 = inlined_call_operand.hbm [shape: f32[8,256], index: 1, kind: input, shape index: {}]   ;;  %s374_s2 = inlined_call_operand.hbm [shape: f32[8,1], index: 2, kind: input, shape index: {}]   ;;  %s375_s3 = inlined_call_operand.hbm [shape: f32[1,8,128], index: 3, kind: output, shape index: {}]  }
   0x1   :  { %9 = vsyncpa [#allocation7], 0 }
   0x2   :  { %10 = vsyncpa [#allocation5], 0  ;;  %s299_s12 = smov [#allocation6]   ;;  %s300_s14 = smov [#allocation3]  }
   0x3   :  { %s39_s13 = sshll.u32 %s299_s12, 4  ;;  %s23_s15 = sshll.u32 %s300_s14, 4  ;;  %s40_s13 = int_to_ptr.vmem [resolvable:$true] %s39_s13  ;;  %s24_s15 = int_to_ptr.vmem [resolvable:$true] %s23_s15 }
   0x4   :  { %s205_s18 = scalar_lea.hbm %s373_s1, 256 }
   0x5   :  { %p206_p0 = scmp.ne.s32.totalorder %s373_s1, %s205_s18  ;;  %p209_p1 = scmp.lt.u32.totalorder %s205_s18, %s373_s1 }
   0x7   :  { %p211_p2 = pnand %p209_p1, %p206_p0 }
   0x9   :  { %214 = shalt.err (!%p211_p2)
}
   0xa   :  { %s215_s23 = scalar_lea.vmem %s40_s13, 256  ;;  %p220_p4 = scmp.lt.s32.totalorder %s40_s13, %s40_s13 }
   0xb   :  { %p216_p3 = scmp.ne.s32.totalorder %s40_s13, %s215_s23  ;;  %p221_p5 = scmp.lt.s32.totalorder %s215_s23, %s215_s23 }
   0xd   :  { %p222_p6 = por %p221_p5, %p220_p4 }
   0xf   :  { %p223_p7 = pnand %p222_p6, %p216_p3 }
  0x11   :  { %226 = shalt.err (!%p223_p7)
}
  0x12   :  { %42 = dma.hbm_to_vmem [thread:$0]  %s373_s1, 256, %s40_s13, [#allocation7]  }
  0x13   :  { %s227_s28 = scalar_lea.hbm %s372_s0, 256 }
  0x14   :  { %p228_p8 = scmp.ne.s32.totalorder %s372_s0, %s227_s28  ;;  %p231_p9 = scmp.lt.u32.totalorder %s227_s28, %s372_s0 }
  0x16   :  { %p233_p10 = pnand %p231_p9, %p228_p8 }
  0x18   :  { %236 = shalt.err (!%p233_p10)
}
  0x19   :  { %s237_s6 = scalar_lea.vmem %s24_s15, 256  ;;  %p242_p12 = scmp.lt.s32.totalorder %s24_s15, %s24_s15 }
  0x1a   :  { %p238_p11 = scmp.ne.s32.totalorder %s24_s15, %s237_s6  ;;  %p243_p13 = scmp.lt.s32.totalorder %s237_s6, %s237_s6 }
  0x1c   :  { %p244_p0 = por %p243_p13, %p242_p12 }
  0x1e   :  { %p245_p1 = pnand %p244_p0, %p238_p11 }
  0x20   :  { %248 = shalt.err (!%p245_p1)
}
  0x21   :  { %26 = dma.hbm_to_vmem [thread:$0]  %s372_s0, 256, %s24_s15, [#allocation4]  }
  0x22   :  { %s301_s8 = smov [#allocation8]   ;;  %s249_s12 = scalar_lea.hbm %s374_s2, 128 }
  0x23   :  { %s54_s9 = sshll.u32 %s301_s8, 4  ;;  %p250_p2 = scmp.ne.s32.totalorder %s374_s2, %s249_s12  ;;  %s55_s9 = int_to_ptr.vmem [resolvable:$true] %s54_s9 }
  0x24   :  { %p253_p3 = scmp.lt.u32.totalorder %s249_s12, %s374_s2 }
  0x26   :  { %p255_p4 = pnand %p253_p3, %p250_p2 }
  0x28   :  { %258 = shalt.err (!%p255_p4)
}
  0x29   :  { %s259_s18 = scalar_lea.vmem %s55_s9, 128  ;;  %p264_p6 = scmp.lt.s32.totalorder %s55_s9, %s55_s9 }
  0x2a   :  { %p260_p5 = scmp.ne.s32.totalorder %s55_s9, %s259_s18  ;;  %p265_p7 = scmp.lt.s32.totalorder %s259_s18, %s259_s18 }
  0x2c   :  { %p266_p8 = por %p265_p7, %p264_p6 }
  0x2e   :  { %p267_p9 = pnand %p266_p8, %p260_p5 }
  0x30   :  { %270 = shalt.err (!%p267_p9)
}
  0x31   :  { %57 = dma.hbm_to_vmem [thread:$0]  %s374_s2, 128, %s55_s9, [#allocation7]  }
  0x32   :  { %293 = dma.done.wait [#allocation4], 256  }
  0x33   :  { %294 = vsyncadd [#allocation4], 4294967040 }
  0x34   :  { %295 = dma.done.wait [#allocation7], 384  }
  0x35   :  { %296 = vsyncadd [#allocation7], 4294966912  ;;  %v302_v0 = vmov 0   ;;  %v98_v1 = vld [vmem:[#allocation8] sm:$0xff]  ;;  %v93_v3 = vld [vmem:[#allocation3 + $0x8] sm:$0xff]  ;;  %s303_s2 = smov [#allocation9]  }
  0x36   :  { %204 = vset.pattern.permute.xlu0 %v302_v0  ;;  %v92_v2 = vld [vmem:[#allocation3] sm:$0xff]  ;;  %v96_v4 = vld [vmem:[#allocation6] sm:$0xff]  ;;  %v97_v5 = vld [vmem:[#allocation6 + $0x8] sm:$0xff]  ;;  %s181_s19 = sshll.u32 %s303_s2, 4  ;;  %s182_s19 = int_to_ptr.vmem [resolvable:$true] %s181_s19 }
  0x37   :  { %105 = vperm.xlu0 %204, %v98_v1   ;;  %v99_v6 = vsub.f32 %v92_v2, %v96_v4  ;;  %v100_v7 = vsub.f32 %v93_v3, %v97_v5  ;;  %s271_s22 = scalar_lea.vmem %s182_s19, 128  ;;  %p276_p11 = scmp.lt.s32.totalorder %s182_s19, %s182_s19 }
  0x38   :  { %p272_p10 = scmp.ne.s32.totalorder %s182_s19, %s271_s22  ;;  %p277_p12 = scmp.lt.s32.totalorder %s271_s22, %s271_s22 }
  0x39   :  { %v101_v8 = vmul.f32 %v99_v6, %v99_v6  ;;  %v102_v9 = vmul.f32 %v100_v7, %v100_v7 }
  0x3a   :  { %p278_p13 = por %p277_p12, %p276_p11 }
  0x3c   :  { %p279_p0 = pnand %p278_p13, %p272_p10 }
  0xb6   :  { %v106_v10 = vpop.permute.xlu0 %105 }
  0xb7   :  { %v108_v11 = vmul.f32 %v106_v10, %v101_v8  ;;  %v109_v12 = vmul.f32 %v106_v10, %v102_v9 }
  0xb9   :  { %v162_v13 = vadd.f32 %v109_v12, %v108_v11 }
  0xbb   :  { %163 = vadd.xlane.f32.xlu0 %v162_v13 }
 0x148   :  { %v164_v14 = vpop.xlane.xlu0 %163 }
 0x149   :  { %v165_v15 = vrot.slane %v164_v14, 4 }
 0x14b   :  { %v166_v16 = vadd.f32 %v165_v15, %v164_v14 }
 0x14d   :  { %v167_v17 = vrot.slane %v166_v16, 2 }
 0x14f   :  { %v168_v18 = vadd.f32 %v167_v17, %v166_v16 }
 0x151   :  { %v169_v19 = vrot.slane %v168_v18, 1 }
 0x153   :  { %v170_v20 = vadd.f32 %v169_v19, %v168_v18 }
 0x155   :  { %197 = vpush %v170_v20 }
 0x186   :  { %s198_s20 = spop %197 }
 0x187   :  { %s172_s21 = smul.f32 0.00024414063, %s198_s20 }
 0x189   :  { %v173_v21 = vstv %s172_s21 }
 0x18a   :  { %174 = vst [vmem:[#allocation9] sm:$0xff] %v173_v21 }
 0x18b   :  { %282 = shalt.err (!%p279_p0)
}
 0x18c   :  { %s283_s25 = scalar_lea.hbm %s375_s3, 128 }
 0x18d   :  { %p284_p1 = scmp.ne.s32.totalorder %s375_s3, %s283_s25  ;;  %p287_p2 = scmp.lt.u32.totalorder %s283_s25, %s375_s3 }
 0x18f   :  { %p289_p3 = pnand %p287_p2, %p284_p1 }
 0x191   :  { %292 = shalt.err (!%p289_p3)
}
 0x192   :  { %184 = dma.vmem_to_hbm [thread:$0]  %s182_s19, 128, %s375_s3, [#allocation5]  }
 0x193   :  { %297 = dma.done.wait [#allocation5], 128  }
 0x194   :  { %298 = vsyncadd [#allocation5], 4294967168 }
 0x195   :  { %188 = vsyncpa [#allocation4], 1 }
 0x196   :  { %189 = vsyncpa [#allocation7], 1 }
 0x197   :  { %190 = vsyncpa [#allocation5], 1 }

</bundles_post_ra>
